<compile_context>
chip_gen: v7x
topology: tpu7x:2x2x1
jax: 0.10.0
libtpu: 0.0.40
codegen_flags: <defaults>
</compile_context>

<pallas_src>
import numpy as np
import jax
import jax.numpy as jnp
from jax import lax
from jax.experimental import pallas as pl
from jax.experimental.pallas import tpu as pltpu

KSIZE = 7
PAD = (KSIZE - 1) // 2        # 3 rows of 'same' zero padding for the k=7 depthwise conv
HALO = 8                      # halo rows per side (>= PAD, multiple of 8 sublanes)
EPS = 1e-5
_MIB = 1024 * 1024


def _round_up(x, m):
    return ((x + m - 1) // m) * m


def _vmem_capacity_bytes():
    """Per-core VMEM capacity (64 MiB on v7x, 128 MiB on v5e/v6e)."""
    try:
        return int(pltpu.get_tpu_info().vmem_capacity_bytes)
    except Exception:
        return 64 * _MIB      # conservative fallback


def _mxu_pad_granularity():
    """Hidden-dim pad: 256 on v6e/v7x (2x256x256 MXU), 128 on v5e (4x128x128)."""
    try:
        kind = jax.devices()[0].device_kind.lower()
    except Exception:
        return 128
    return 256 if any(s in kind for s in ("v6", "v7", "7x")) else 128


def _choose_tl(L, Cp, Hp, budget_bytes):
    """Largest length tile (multiple of 8) whose estimated live VMEM fits the budget."""
    fixed = (2 * 2 * Cp * Hp * 2          # w1 / w2 bf16, double-buffered by the pipeline
             + 2 * (KSIZE + 4) * Cp * 4   # wdw / bdw / gamma / beta / b2
             + 2 * Hp * 4)                # b1

    def live(tl):
        win = tl + 2 * HALO
        return (2 * win * Cp * 4          # manually double-buffered input window (f32)
                + 2 * tl * Cp * 4         # pipelined output block (double-buffered)
                + tl * Hp * 4             # h intermediate (f32)
                + 3 * tl * Cp * 4)        # acc / xn / y temporaries

    tl = min(1024, max(8, _round_up(L, 8)))
    while tl > 8 and fixed + live(tl) > budget_bytes:
        tl -= 8
    return tl


def _gelu(h, approx):
    if approx:
        # tanh approximation: the transcendental lands on the EUP slot instead of a long
        # f32 erf polynomial on the VALU (<= ~3e-3 abs deviation from exact GELU).
        return 0.5 * h * (1.0 + jnp.tanh(0.7978845608028654 * (h + 0.044715 * h * h * h)))
    return 0.5 * h * (1.0 + lax.erf(h * 0.7071067811865475))


def convnext_block_pallas_nlc(x_nlc, params, tl=None, approx_gelu=True):
    """Channels-last entry point: x (B, L, C) -> (B, L, C)."""
    wdw, bdw, gamma, beta, w1t, b1, w2t, b2 = params
    if x_nlc.dtype != jnp.float32:
        # TODO(synk): optionally stream the halo window in bf16 to halve input DMA bytes.
        x_nlc = x_nlc.astype(jnp.float32)
    B, L, C = x_nlc.shape
    H = w1t.shape[1]

    # Keep C at 128-lane granularity (avoids inflating HBM activation traffic); the
    # hidden dim, which only lives in VMEM/weights, gets the full MXU-depth pad.
    Cp = _round_up(C, 128)
    Hp = _round_up(H, _mxu_pad_granularity())

    vmem_cap = _vmem_capacity_bytes()
    vmem_limit = max(32 * _MIB, vmem_cap - 16 * _MIB)
    if tl is None:
        tl = _choose_tl(L, Cp, Hp, int(0.85 * vmem_limit))
    TL = max(8, _round_up(tl, 8))
    WIN = TL + 2 * HALO
    n_l = -(-L // TL)
    L_out = n_l * TL
    L_store = max(L, WIN)                 # the in-kernel window clamp needs >= one window

    # --- zero-pad parameters (exact: padded lanes of gamma/beta/weights are zero) ---
    def _cpad(a):
        return jnp.pad(a, ((0, 0), (0, Cp - a.shape[1]))) if Cp != a.shape[1] else a

    wdw_p, bdw_p = _cpad(wdw), _cpad(bdw)
    gamma_p, beta_p, b2_p = _cpad(gamma), _cpad(beta), _cpad(b2)
    w1p = jnp.zeros((Cp, Hp), jnp.float32).at[:C, :H].set(w1t).astype(jnp.bfloat16)
    b1p = jnp.zeros((1, Hp), jnp.float32).at[:, :H].set(b1)
    w2p = jnp.zeros((Hp, Cp), jnp.float32).at[:H, :C].set(w2t).astype(jnp.bfloat16)

    # Only copy the activation if the channel dim must be lane-padded (or L < WIN);
    # otherwise the kernel streams the unpadded array directly from HBM.
    if Cp != C or L_store != L:
        x_store = jnp.pad(x_nlc, ((0, 0), (0, L_store - L), (0, Cp - C)))
    else:
        x_store = x_nlc

    inv_c = 1.0 / C
    pad_corr = float(Cp - C) / C          # LayerNorm variance correction for zero lanes
    n_total = B * n_l
    off0 = HALO - PAD

    # Static boundary bookkeeping: the first tile shifts its window down by HALO (left
    # zero halo); tiles whose window reaches past L_store shift up by d and zero the tail.
    tail_clips = [(j, j * TL + TL + HALO - L_store)
                  for j in range(1, n_l) if j * TL + TL + HALO > L_store]

    def kernel(x_hbm, wdw_ref, bdw_ref, gamma_ref, beta_ref,
               w1_ref, b1_ref, w2_ref, b2_ref, out_ref, xbuf, sem):
        b = pl.program_id(0)
        j = pl.program_id(1)
        t = b * n_l + j                                 # linear step counter
        slot = lax.rem(t, 2)

        def copy(bb, jj, sl):
            start = jnp.clip(jj * TL - HALO, 0, L_store - WIN)
            return pltpu.make_async_copy(
                x_hbm.at[bb, pl.ds(start, WIN), :], xbuf.at[sl], sem.at[sl])

        # Prime the manual pipeline exactly once, at the very first grid step.
        @pl.when(t == 0)
        def _():
            copy(b, j, slot).start()

        copy(b, j, slot).wait()

        # Cross-row prefetch: the last tile of a batch row fetches the first window of
        # the next row, so no per-batch-row DMA bubble remains.
        @pl.when(t + 1 < n_total)
        def _():
            nxt = j + 1 < n_l
            nb = jnp.where(nxt, b, b + 1)
            nj = jnp.where(nxt, j + 1, 0)
            copy(nb, nj, 1 - slot).start()

        xw = xbuf.at[slot]                              # (WIN, Cp) live window view

        # ---- boundary fix-up (static shifts; only the first / tail-clipped tiles) ----
        @pl.when(j == 0)
        def _():
            body = xw[0:WIN - HALO, :]
            xw[HALO:WIN, :] = body
            xw[0:HALO, :] = jnp.zeros((HALO, Cp), jnp.float32)

        for (cj, d) in tail_clips:
            @pl.when(j == cj)
            def _(d=d):
                body = xw[d:WIN, :]
                xw[0:WIN - d, :] = body
                xw[WIN - d:WIN, :] = jnp.zeros((d, Cp), jnp.float32)

        # ---- depthwise conv, kernel_size=7, padding='same', groups=C (f32, VPU) ----
        wdw_v = wdw_ref[...]                            # (7, Cp)
        acc = xw[off0:off0 + TL, :] * wdw_v[0:1, :]
        for k in range(1, KSIZE):                       # static unroll over the 7 taps
            acc = acc + xw[off0 + k:off0 + k + TL, :] * wdw_v[k:k + 1, :]
        acc = acc + bdw_ref[...]

        # ---- LayerNorm over the true C channels (padded lanes are exact zeros) ----
        mean = jnp.sum(acc, axis=-1, keepdims=True) * inv_c
        cen = acc - mean
        var = jnp.sum(cen * cen, axis=-1, keepdims=True) * inv_c - pad_corr * mean * mean
        xn = cen * lax.rsqrt(var + EPS)
        xn = xn * gamma_ref[...] + beta_ref[...]

        # ---- pointwise conv 1 (bf16 MXU inputs, f32 accumulate) + GELU ----
        h = jnp.dot(xn.astype(jnp.bfloat16), w1_ref[...],
                    preferred_element_type=jnp.float32) + b1_ref[...]
        h = _gelu(h, approx_gelu)

        # ---- pointwise conv 2 + residual (re-read from the VMEM window) ----
        y = jnp.dot(h.astype(jnp.bfloat16), w2_ref[...],
                    preferred_element_type=jnp.float32) + b2_ref[...]
        out_ref[0] = (y + xw[HALO:HALO + TL, :]).astype(out_ref.dtype)

    grid_spec = pltpu.PrefetchScalarGridSpec(
        num_scalar_prefetch=0,
        grid=(B, n_l),
        in_specs=[
            pl.BlockSpec(memory_space=pl.ANY),               # input stays in HBM (manual DMA)
            # TODO(synk): pipeline_mode=pl.Buffered(1) on these grid-invariant blocks would
            # save one VMEM copy of each weight inside v7x's 64 MiB budget.
            pl.BlockSpec((KSIZE, Cp), lambda b, j: (0, 0)),  # depthwise weight
            pl.BlockSpec((1, Cp), lambda b, j: (0, 0)),      # depthwise bias
            pl.BlockSpec((1, Cp), lambda b, j: (0, 0)),      # gamma
            pl.BlockSpec((1, Cp), lambda b, j: (0, 0)),      # beta
            pl.BlockSpec((Cp, Hp), lambda b, j: (0, 0)),     # w1^T (bf16)
            pl.BlockSpec((1, Hp), lambda b, j: (0, 0)),      # b1
            pl.BlockSpec((Hp, Cp), lambda b, j: (0, 0)),     # w2^T (bf16)
            pl.BlockSpec((1, Cp), lambda b, j: (0, 0)),      # b2
        ],
        out_specs=pl.BlockSpec((1, TL, Cp), lambda b, j: (b, j, 0)),
        scratch_shapes=[
            pltpu.VMEM((2, WIN, Cp), jnp.float32),
            pltpu.SemaphoreType.DMA((2,)),
        ],
    )

    cost = pl.CostEstimate(
        flops=int(B * L_out * (4 * Cp * Hp + 2 * KSIZE * Cp + 10 * Cp)),
        transcendentals=int(B * L_out * Hp),
        bytes_accessed=int(4 * B * L_store * Cp + 4 * B * L_out * Cp
                           + 2 * 2 * Cp * Hp + 4 * (KSIZE + 4) * Cp + 4 * Hp),
    )

    out = pl.pallas_call(
        kernel,
        out_shape=jax.ShapeDtypeStruct((B, L_out, Cp), x_nlc.dtype),
        grid_spec=grid_spec,
        compiler_params=pltpu.CompilerParams(
            # TODO(synk): on v7x (2 TensorCores) add a leading core-split of the length
            # axis; with the cross-row prefetch both existing axes must stay "arbitrary".
            dimension_semantics=("arbitrary", "arbitrary"),
            vmem_limit_bytes=int(vmem_limit)),
        cost_estimate=cost,
    )(x_store, wdw_p, bdw_p, gamma_p, beta_p, w1p, b1p, w2p, b2_p)

    if L_out != L or Cp != C:
        out = out[:, :L, :C]
    return out


def convnext_block_pallas(x_ncl, params, tl=None, approx_gelu=True):
    """PyTorch-layout entry point: x (B, C, L) -> (B, C, L).  Keep the surrounding model
    channels-last and call convnext_block_pallas_nlc directly to avoid the transposes."""
    out_nlc = convnext_block_pallas_nlc(jnp.transpose(x_ncl, (0, 2, 1)), params,
                                        tl=tl, approx_gelu=approx_gelu)
    return jnp.transpose(out_nlc, (0, 2, 1))


def convnext_block_ref(x_ncl, params, approx_gelu=True):
    """Pure-JAX reference (mirrors the kernel math: bf16 matmul inputs, chosen GELU)."""
    wdw, bdw, gamma, beta, w1t, b1, w2t, b2 = params
    B, C, L = x_ncl.shape
    x = jnp.transpose(x_ncl, (0, 2, 1))                       # (B, L, C)
    xp = jnp.pad(x, ((0, 0), (PAD, PAD), (0, 0)))
    dw = sum(xp[:, k:k + L, :] * wdw[k] for k in range(KSIZE)) + bdw
    mean = dw.mean(-1, keepdims=True)
    var = ((dw - mean) ** 2).mean(-1, keepdims=True)
    xn = (dw - mean) * lax.rsqrt(var + EPS) * gamma + beta
    h = jnp.dot(xn.astype(jnp.bfloat16), w1t.astype(jnp.bfloat16),
                preferred_element_type=jnp.float32) + b1
    h = _gelu(h, approx_gelu)
    y = jnp.dot(h.astype(jnp.bfloat16), w2t.astype(jnp.bfloat16),
                preferred_element_type=jnp.float32) + b2
    return jnp.transpose(y + x, (0, 2, 1))


def init_params(key, in_channels, out_channels):
    hidden = int(1.5 * out_channels)
    ks = jax.random.split(key, 6)
    scale = 0.1
    # depthwise conv: PyTorch weight shape (C, 1, 7) -> stored as (7, C)
    wdw = scale * jax.random.normal(ks[0], (KSIZE, in_channels), jnp.float32)
    bdw = scale * jax.random.normal(ks[1], (1, in_channels), jnp.float32)
    gamma = jnp.ones((1, in_channels), jnp.float32)
    beta = jnp.zeros((1, in_channels), jnp.float32)
    # pointwise conv 1: PyTorch weight (H, C, 1) -> stored transposed (C, H)
    w1t = scale * jax.random.normal(ks[2], (in_channels, hidden), jnp.float32)
    b1 = scale * jax.random.normal(ks[3], (1, hidden), jnp.float32)
    # pointwise conv 2: PyTorch weight (C, H, 1) -> stored transposed (H, C)
    w2t = scale * jax.random.normal(ks[4], (hidden, in_channels), jnp.float32)
    b2 = scale * jax.random.normal(ks[5], (1, in_channels), jnp.float32)
    return (wdw, bdw, gamma, beta, w1t, b1, w2t, b2)


if __name__ == "__main__":
    key = jax.random.PRNGKey(0)
    kx1, kx2, kx3, kp1, kp3 = jax.random.split(key, 5)

    # 1) module-scale example: B=2, C=4, L=16 (lane-pad path, single tile per row,
    #    cross-row prefetch b=0 -> b=1).
    B, C, L = 2, 4, 16
    params = init_params(kp1, in_channels=C, out_channels=C)
    x1 = jax.random.normal(kx1, (B, C, L), jnp.float32)
    out1 = jax.block_until_ready(convnext_block_pallas(x1, params))
    ref1 = convnext_block_ref(x1, params)
    np.testing.assert_allclose(np.asarray(out1), np.asarray(ref1), rtol=1e-2, atol=1e-2)

    # 2) multi-tile path: first / middle / tail-clipped windows and cross-row prefetch.
    L2 = 40
    x2 = jax.random.normal(kx2, (B, C, L2), jnp.float32)
    out2 = jax.block_until_ready(convnext_block_pallas(x2, params, tl=8))
    ref2 = convnext_block_ref(x2, params)
    np.testing.assert_allclose(np.asarray(out2), np.asarray(ref2), rtol=1e-2, atol=1e-2)

    # 3) lane-aligned path: C=128, no wrapper-side activation copy at all.
    C3, L3 = 128, 64
    params3 = init_params(kp3, in_channels=C3, out_channels=C3)
    x3 = jax.random.normal(kx3, (1, C3, L3), jnp.float32)
    out3 = jax.block_until_ready(convnext_block_pallas(x3, params3, tl=16))
    ref3 = convnext_block_ref(x3, params3)
    np.testing.assert_allclose(np.asarray(out3), np.asarray(ref3), rtol=1e-2, atol=1e-2)

    print("KERNEL_OK")
</pallas_src>

<mosaic_0001>
module attributes {stable_mosaic.version = 11 : i64} {
  func.func @kernel(%arg0: i32, %arg1: i32, %arg2: memref<2x32x128xf32, #tpu.memory_space<any>>, %arg3: memref<7x128xf32, #tpu.memory_space<vmem>>, %arg4: memref<1x128xf32, #tpu.memory_space<vmem>>, %arg5: memref<1x128xf32, #tpu.memory_space<vmem>>, %arg6: memref<1x128xf32, #tpu.memory_space<vmem>>, %arg7: memref<128x128xbf16, #tpu.memory_space<vmem>>, %arg8: memref<1x128xf32, #tpu.memory_space<vmem>>, %arg9: memref<128x128xbf16, #tpu.memory_space<vmem>>, %arg10: memref<1x128xf32, #tpu.memory_space<vmem>>, %arg11: memref<1x16x128xf32, #tpu.memory_space<vmem>>, %arg12: memref<2x32x128xf32, #tpu.memory_space<vmem>>, %arg13: memref<2x!tpu.dma_semaphore, #tpu.memory_space<semaphore_mem>>) attributes {dimension_semantics = [#tpu.dimension_semantics<arbitrary>, #tpu.dimension_semantics<arbitrary>], iteration_bounds = array<i64: 2, 1>, scalar_prefetch = 0 : i64, scratch_operands = 2 : i64, tpu.core_type = #tpu.core_type<tc>, window_params = [{}, {pipeline_mode = #tpu.pipeline_mode<synchronous>, transform_indices = @transform_1, window_bounds = array<i64: 7, 128>}, {pipeline_mode = #tpu.pipeline_mode<synchronous>, transform_indices = @transform_2, window_bounds = array<i64: 1, 128>}, {pipeline_mode = #tpu.pipeline_mode<synchronous>, transform_indices = @transform_3, window_bounds = array<i64: 1, 128>}, {pipeline_mode = #tpu.pipeline_mode<synchronous>, transform_indices = @transform_4, window_bounds = array<i64: 1, 128>}, {pipeline_mode = #tpu.pipeline_mode<synchronous>, transform_indices = @transform_5, window_bounds = array<i64: 128, 128>}, {pipeline_mode = #tpu.pipeline_mode<synchronous>, transform_indices = @transform_6, window_bounds = array<i64: 1, 128>}, {pipeline_mode = #tpu.pipeline_mode<synchronous>, transform_indices = @transform_7, window_bounds = array<i64: 128, 128>}, {pipeline_mode = #tpu.pipeline_mode<synchronous>, transform_indices = @transform_8, window_bounds = array<i64: 1, 128>}, {transform_indices = @transform_9, window_bounds = array<i64: 1, 16, 128>}]} {
    %c1_i32 = arith.constant 1 : i32
    %0 = arith.muli %arg0, %c1_i32 : i32
    %1 = arith.addi %0, %arg1 : i32
    %c2_i32 = arith.constant 2 : i32
    %2 = arith.remsi %1, %c2_i32 : i32
    %c0_i32 = arith.constant 0 : i32
    %3 = arith.cmpi eq, %1, %c0_i32 : i32
    %4 = arith.extui %3 : i1 to i32
    %c0_i32_0 = arith.constant 0 : i32
    %5 = arith.cmpi ne, %4, %c0_i32_0 : i32
    scf.if %5 {
      %c16_i32_65 = arith.constant 16 : i32
      %133 = arith.muli %arg1, %c16_i32_65 : i32
      %c8_i32_66 = arith.constant 8 : i32
      %134 = arith.subi %133, %c8_i32_66 : i32
      %c0_i32_67 = arith.constant 0 : i32
      %c0_i32_68 = arith.constant 0 : i32
      %135 = arith.maxsi %c0_i32_67, %134 : i32
      %136 = arith.minsi %c0_i32_68, %135 : i32
      %c0_i32_69 = arith.constant 0 : i32
      %137 = tpu.memref_slice %arg2[%arg0, %136, %c0_i32_69] : memref<2x32x128xf32, #tpu.memory_space<any>> -> memref<1x32x128xf32, #tpu.memory_space<any>>
      %138 = tpu.memref_squeeze %137 : memref<1x32x128xf32, #tpu.memory_space<any>> -> memref<32x128xf32, #tpu.memory_space<any>>
      %c0_i32_70 = arith.constant 0 : i32
      %c0_i32_71 = arith.constant 0 : i32
      %139 = tpu.memref_slice %arg12[%2, %c0_i32_70, %c0_i32_71] : memref<2x32x128xf32, #tpu.memory_space<vmem>> -> memref<1x32x128xf32, #tpu.memory_space<vmem>>
      %140 = tpu.memref_squeeze %139 : memref<1x32x128xf32, #tpu.memory_space<vmem>> -> memref<32x128xf32, #tpu.memory_space<vmem>>
      %141 = tpu.memref_slice %arg13[%2] : memref<2x!tpu.dma_semaphore, #tpu.memory_space<semaphore_mem>> -> memref<1x!tpu.dma_semaphore, #tpu.memory_space<semaphore_mem>>
      %142 = tpu.memref_squeeze %141 : memref<1x!tpu.dma_semaphore, #tpu.memory_space<semaphore_mem>> -> memref<!tpu.dma_semaphore, #tpu.memory_space<semaphore_mem>>
      tpu.enqueue_dma source(%138 : memref<32x128xf32, #tpu.memory_space<any>>) target(%140 : memref<32x128xf32, #tpu.memory_space<vmem>>) target_semaphore(%142 : memref<!tpu.dma_semaphore, #tpu.memory_space<semaphore_mem>>)
    } else {
    }
    %c16_i32 = arith.constant 16 : i32
    %6 = arith.muli %arg1, %c16_i32 : i32
    %c8_i32 = arith.constant 8 : i32
    %7 = arith.subi %6, %c8_i32 : i32
    %c0_i32_1 = arith.constant 0 : i32
    %c0_i32_2 = arith.constant 0 : i32
    %8 = arith.maxsi %c0_i32_1, %7 : i32
    %9 = arith.minsi %c0_i32_2, %8 : i32
    %c0_i32_3 = arith.constant 0 : i32
    %10 = tpu.memref_slice %arg2[%arg0, %9, %c0_i32_3] : memref<2x32x128xf32, #tpu.memory_space<any>> -> memref<1x32x128xf32, #tpu.memory_space<any>>
    %11 = tpu.memref_squeeze %10 : memref<1x32x128xf32, #tpu.memory_space<any>> -> memref<32x128xf32, #tpu.memory_space<any>>
    %c0_i32_4 = arith.constant 0 : i32
    %c0_i32_5 = arith.constant 0 : i32
    %12 = tpu.memref_slice %arg12[%2, %c0_i32_4, %c0_i32_5] : memref<2x32x128xf32, #tpu.memory_space<vmem>> -> memref<1x32x128xf32, #tpu.memory_space<vmem>>
    %13 = tpu.memref_squeeze %12 : memref<1x32x128xf32, #tpu.memory_space<vmem>> -> memref<32x128xf32, #tpu.memory_space<vmem>>
    %14 = tpu.memref_slice %arg13[%2] : memref<2x!tpu.dma_semaphore, #tpu.memory_space<semaphore_mem>> -> memref<1x!tpu.dma_semaphore, #tpu.memory_space<semaphore_mem>>
    %15 = tpu.memref_squeeze %14 : memref<1x!tpu.dma_semaphore, #tpu.memory_space<semaphore_mem>> -> memref<!tpu.dma_semaphore, #tpu.memory_space<semaphore_mem>>
    tpu.wait_dma2 semaphore(%15 : memref<!tpu.dma_semaphore, #tpu.memory_space<semaphore_mem>>) src(%11 : memref<32x128xf32, #tpu.memory_space<any>>) dst(%13 : memref<32x128xf32, #tpu.memory_space<vmem>>)
    %c1_i32_6 = arith.constant 1 : i32
    %16 = arith.addi %1, %c1_i32_6 : i32
    %c2_i32_7 = arith.constant 2 : i32
    %17 = arith.cmpi slt, %16, %c2_i32_7 : i32
    %18 = arith.extui %17 : i1 to i32
    %c0_i32_8 = arith.constant 0 : i32
    %19 = arith.cmpi ne, %18, %c0_i32_8 : i32
    scf.if %19 {
      %c1_i32_65 = arith.constant 1 : i32
      %133 = arith.addi %arg1, %c1_i32_65 : i32
      %c1_i32_66 = arith.constant 1 : i32
      %134 = arith.cmpi slt, %133, %c1_i32_66 : i32
      %c1_i32_67 = arith.constant 1 : i32
      %135 = arith.addi %arg0, %c1_i32_67 : i32
      %136 = arith.select %134, %arg0, %135 : i32
      %c1_i32_68 = arith.constant 1 : i32
      %137 = arith.addi %arg1, %c1_i32_68 : i32
      %c0_i32_69 = arith.constant 0 : i32
      %138 = arith.select %134, %137, %c0_i32_69 : i32
      %c1_i32_70 = arith.constant 1 : i32
      %139 = arith.subi %c1_i32_70, %2 : i32
      %c16_i32_71 = arith.constant 16 : i32
      %140 = arith.muli %138, %c16_i32_71 : i32
      %c8_i32_72 = arith.constant 8 : i32
      %141 = arith.subi %140, %c8_i32_72 : i32
      %c0_i32_73 = arith.constant 0 : i32
      %c0_i32_74 = arith.constant 0 : i32
      %142 = arith.maxsi %c0_i32_73, %141 : i32
      %143 = arith.minsi %c0_i32_74, %142 : i32
      %c0_i32_75 = arith.constant 0 : i32
      %144 = tpu.memref_slice %arg2[%136, %143, %c0_i32_75] : memref<2x32x128xf32, #tpu.memory_space<any>> -> memref<1x32x128xf32, #tpu.memory_space<any>>
      %145 = tpu.memref_squeeze %144 : memref<1x32x128xf32, #tpu.memory_space<any>> -> memref<32x128xf32, #tpu.memory_space<any>>
      %c0_i32_76 = arith.constant 0 : i32
      %c0_i32_77 = arith.constant 0 : i32
      %146 = tpu.memref_slice %arg12[%139, %c0_i32_76, %c0_i32_77] : memref<2x32x128xf32, #tpu.memory_space<vmem>> -> memref<1x32x128xf32, #tpu.memory_space<vmem>>
      %147 = tpu.memref_squeeze %146 : memref<1x32x128xf32, #tpu.memory_space<vmem>> -> memref<32x128xf32, #tpu.memory_space<vmem>>
      %148 = tpu.memref_slice %arg13[%139] : memref<2x!tpu.dma_semaphore, #tpu.memory_space<semaphore_mem>> -> memref<1x!tpu.dma_semaphore, #tpu.memory_space<semaphore_mem>>
      %149 = tpu.memref_squeeze %148 : memref<1x!tpu.dma_semaphore, #tpu.memory_space<semaphore_mem>> -> memref<!tpu.dma_semaphore, #tpu.memory_space<semaphore_mem>>
      tpu.enqueue_dma source(%145 : memref<32x128xf32, #tpu.memory_space<any>>) target(%147 : memref<32x128xf32, #tpu.memory_space<vmem>>) target_semaphore(%149 : memref<!tpu.dma_semaphore, #tpu.memory_space<semaphore_mem>>)
    } else {
    }
    %c0_i32_9 = arith.constant 0 : i32
    %20 = arith.cmpi eq, %arg1, %c0_i32_9 : i32
    %21 = arith.extui %20 : i1 to i32
    %c0_i32_10 = arith.constant 0 : i32
    %22 = arith.cmpi ne, %21, %c0_i32_10 : i32
    scf.if %22 {
      %c0_i32_65 = arith.constant 0 : i32
      %c0_i32_66 = arith.constant 0 : i32
      %133 = tpu.memref_slice %arg12[%2, %c0_i32_65, %c0_i32_66] : memref<2x32x128xf32, #tpu.memory_space<vmem>> -> memref<1x32x128xf32, #tpu.memory_space<vmem>>
      %134 = tpu.memref_squeeze %133 : memref<1x32x128xf32, #tpu.memory_space<vmem>> -> memref<32x128xf32, #tpu.memory_space<vmem>>
      %c0_67 = arith.constant 0 : index
      %c0_68 = arith.constant 0 : index
      %135 = vector.load %134[%c0_67, %c0_68] : memref<32x128xf32, #tpu.memory_space<vmem>>, vector<24x128xf32>
      %c0_i32_69 = arith.constant 0 : i32
      %c0_i32_70 = arith.constant 0 : i32
      %136 = tpu.memref_slice %arg12[%2, %c0_i32_69, %c0_i32_70] : memref<2x32x128xf32, #tpu.memory_space<vmem>> -> memref<1x32x128xf32, #tpu.memory_space<vmem>>
      %137 = tpu.memref_squeeze %136 : memref<1x32x128xf32, #tpu.memory_space<vmem>> -> memref<32x128xf32, #tpu.memory_space<vmem>>
      %c8_71 = arith.constant 8 : index
      %c0_72 = arith.constant 0 : index
      %138 = vector.load %137[%c8_71, %c0_72] : memref<32x128xf32, #tpu.memory_space<vmem>>, vector<24x128xf32>
      tpu.vector_store %137[%c8_71, %c0_72], %135 {strides = array<i32>} : memref<32x128xf32, #tpu.memory_space<vmem>>, vector<24x128xf32>,
      %cst_73 = arith.constant 0.000000e+00 : f32
      %139 = vector.broadcast %cst_73 : f32 to vector<8x128xf32>
      %c0_i32_74 = arith.constant 0 : i32
      %c0_i32_75 = arith.constant 0 : i32
      %140 = tpu.memref_slice %arg12[%2, %c0_i32_74, %c0_i32_75] : memref<2x32x128xf32, #tpu.memory_space<vmem>> -> memref<1x32x128xf32, #tpu.memory_space<vmem>>
      %141 = tpu.memref_squeeze %140 : memref<1x32x128xf32, #tpu.memory_space<vmem>> -> memref<32x128xf32, #tpu.memory_space<vmem>>
      %c0_76 = arith.constant 0 : index
      %c0_77 = arith.constant 0 : index
      %142 = vector.load %141[%c0_76, %c0_77] : memref<32x128xf32, #tpu.memory_space<vmem>>, vector<8x128xf32>
      tpu.vector_store %141[%c0_76, %c0_77], %139 {strides = array<i32>} : memref<32x128xf32, #tpu.memory_space<vmem>>, vector<8x128xf32>,
    } else {
    }
    %c0 = arith.constant 0 : index
    %c0_11 = arith.constant 0 : index
    %23 = vector.load %arg3[%c0, %c0_11] : memref<7x128xf32, #tpu.memory_space<vmem>>, vector<7x128xf32>
    %c0_i32_12 = arith.constant 0 : i32
    %c0_i32_13 = arith.constant 0 : i32
    %24 = tpu.memref_slice %arg12[%2, %c0_i32_12, %c0_i32_13] : memref<2x32x128xf32, #tpu.memory_space<vmem>> -> memref<1x32x128xf32, #tpu.memory_space<vmem>>
    %25 = tpu.memref_squeeze %24 : memref<1x32x128xf32, #tpu.memory_space<vmem>> -> memref<32x128xf32, #tpu.memory_space<vmem>>
    %c5 = arith.constant 5 : index
    %c0_14 = arith.constant 0 : index
    %26 = vector.load %25[%c5, %c0_14] : memref<32x128xf32, #tpu.memory_space<vmem>>, vector<16x128xf32>
    %27 = vector.extract_strided_slice %23 {offsets = [0, 0], sizes = [1, 128], strides = [1, 1]} : vector<7x128xf32> to vector<1x128xf32>
    %28 = vector.broadcast %27 : vector<1x128xf32> to vector<16x128xf32>
    %29 = arith.mulf %26, %28 : vector<16x128xf32>
    %c0_i32_15 = arith.constant 0 : i32
    %c0_i32_16 = arith.constant 0 : i32
    %30 = tpu.memref_slice %arg12[%2, %c0_i32_15, %c0_i32_16] : memref<2x32x128xf32, #tpu.memory_space<vmem>> -> memref<1x32x128xf32, #tpu.memory_space<vmem>>
    %31 = tpu.memref_squeeze %30 : memref<1x32x128xf32, #tpu.memory_space<vmem>> -> memref<32x128xf32, #tpu.memory_space<vmem>>
    %c6 = arith.constant 6 : index
    %c0_17 = arith.constant 0 : index
    %32 = vector.load %31[%c6, %c0_17] : memref<32x128xf32, #tpu.memory_space<vmem>>, vector<16x128xf32>
    %33 = vector.extract_strided_slice %23 {offsets = [1, 0], sizes = [1, 128], strides = [1, 1]} : vector<7x128xf32> to vector<1x128xf32>
    %34 = vector.broadcast %33 : vector<1x128xf32> to vector<16x128xf32>
    %35 = arith.mulf %32, %34 : vector<16x128xf32>
    %36 = arith.addf %29, %35 : vector<16x128xf32>
    %c0_i32_18 = arith.constant 0 : i32
    %c0_i32_19 = arith.constant 0 : i32
    %37 = tpu.memref_slice %arg12[%2, %c0_i32_18, %c0_i32_19] : memref<2x32x128xf32, #tpu.memory_space<vmem>> -> memref<1x32x128xf32, #tpu.memory_space<vmem>>
    %38 = tpu.memref_squeeze %37 : memref<1x32x128xf32, #tpu.memory_space<vmem>> -> memref<32x128xf32, #tpu.memory_space<vmem>>
    %c7 = arith.constant 7 : index
    %c0_20 = arith.constant 0 : index
    %39 = vector.load %38[%c7, %c0_20] : memref<32x128xf32, #tpu.memory_space<vmem>>, vector<16x128xf32>
    %40 = vector.extract_strided_slice %23 {offsets = [2, 0], sizes = [1, 128], strides = [1, 1]} : vector<7x128xf32> to vector<1x128xf32>
    %41 = vector.broadcast %40 : vector<1x128xf32> to vector<16x128xf32>
    %42 = arith.mulf %39, %41 : vector<16x128xf32>
    %43 = arith.addf %36, %42 : vector<16x128xf32>
    %c0_i32_21 = arith.constant 0 : i32
    %c0_i32_22 = arith.constant 0 : i32
    %44 = tpu.memref_slice %arg12[%2, %c0_i32_21, %c0_i32_22] : memref<2x32x128xf32, #tpu.memory_space<vmem>> -> memref<1x32x128xf32, #tpu.memory_space<vmem>>
    %45 = tpu.memref_squeeze %44 : memref<1x32x128xf32, #tpu.memory_space<vmem>> -> memref<32x128xf32, #tpu.memory_space<vmem>>
    %c8 = arith.constant 8 : index
    %c0_23 = arith.constant 0 : index
    %46 = vector.load %45[%c8, %c0_23] : memref<32x128xf32, #tpu.memory_space<vmem>>, vector<16x128xf32>
    %47 = vector.extract_strided_slice %23 {offsets = [3, 0], sizes = [1, 128], strides = [1, 1]} : vector<7x128xf32> to vector<1x128xf32>
    %48 = vector.broadcast %47 : vector<1x128xf32> to vector<16x128xf32>
    %49 = arith.mulf %46, %48 : vector<16x128xf32>
    %50 = arith.addf %43, %49 : vector<16x128xf32>
    %c0_i32_24 = arith.constant 0 : i32
    %c0_i32_25 = arith.constant 0 : i32
    %51 = tpu.memref_slice %arg12[%2, %c0_i32_24, %c0_i32_25] : memref<2x32x128xf32, #tpu.memory_space<vmem>> -> memref<1x32x128xf32, #tpu.memory_space<vmem>>
    %52 = tpu.memref_squeeze %51 : memref<1x32x128xf32, #tpu.memory_space<vmem>> -> memref<32x128xf32, #tpu.memory_space<vmem>>
    %c9 = arith.constant 9 : index
    %c0_26 = arith.constant 0 : index
    %53 = vector.load %52[%c9, %c0_26] : memref<32x128xf32, #tpu.memory_space<vmem>>, vector<16x128xf32>
    %54 = vector.extract_strided_slice %23 {offsets = [4, 0], sizes = [1, 128], strides = [1, 1]} : vector<7x128xf32> to vector<1x128xf32>
    %55 = vector.broadcast %54 : vector<1x128xf32> to vector<16x128xf32>
    %56 = arith.mulf %53, %55 : vector<16x128xf32>
    %57 = arith.addf %50, %56 : vector<16x128xf32>
    %c0_i32_27 = arith.constant 0 : i32
    %c0_i32_28 = arith.constant 0 : i32
    %58 = tpu.memref_slice %arg12[%2, %c0_i32_27, %c0_i32_28] : memref<2x32x128xf32, #tpu.memory_space<vmem>> -> memref<1x32x128xf32, #tpu.memory_space<vmem>>
    %59 = tpu.memref_squeeze %58 : memref<1x32x128xf32, #tpu.memory_space<vmem>> -> memref<32x128xf32, #tpu.memory_space<vmem>>
    %c10 = arith.constant 10 : index
    %c0_29 = arith.constant 0 : index
    %60 = vector.load %59[%c10, %c0_29] : memref<32x128xf32, #tpu.memory_space<vmem>>, vector<16x128xf32>
    %61 = vector.extract_strided_slice %23 {offsets = [5, 0], sizes = [1, 128], strides = [1, 1]} : vector<7x128xf32> to vector<1x128xf32>
    %62 = vector.broadcast %61 : vector<1x128xf32> to vector<16x128xf32>
    %63 = arith.mulf %60, %62 : vector<16x128xf32>
    %64 = arith.addf %57, %63 : vector<16x128xf32>
    %c0_i32_30 = arith.constant 0 : i32
    %c0_i32_31 = arith.constant 0 : i32
    %65 = tpu.memref_slice %arg12[%2, %c0_i32_30, %c0_i32_31] : memref<2x32x128xf32, #tpu.memory_space<vmem>> -> memref<1x32x128xf32, #tpu.memory_space<vmem>>
    %66 = tpu.memref_squeeze %65 : memref<1x32x128xf32, #tpu.memory_space<vmem>> -> memref<32x128xf32, #tpu.memory_space<vmem>>
    %c11 = arith.constant 11 : index
    %c0_32 = arith.constant 0 : index
    %67 = vector.load %66[%c11, %c0_32] : memref<32x128xf32, #tpu.memory_space<vmem>>, vector<16x128xf32>
    %68 = vector.extract_strided_slice %23 {offsets = [6, 0], sizes = [1, 128], strides = [1, 1]} : vector<7x128xf32> to vector<1x128xf32>
    %69 = vector.broadcast %68 : vector<1x128xf32> to vector<16x128xf32>
    %70 = arith.mulf %67, %69 : vector<16x128xf32>
    %71 = arith.addf %64, %70 : vector<16x128xf32>
    %c0_33 = arith.constant 0 : index
    %c0_34 = arith.constant 0 : index
    %72 = vector.load %arg4[%c0_33, %c0_34] : memref<1x128xf32, #tpu.memory_space<vmem>>, vector<1x128xf32>
    %73 = vector.broadcast %72 : vector<1x128xf32> to vector<16x128xf32>
    %74 = arith.addf %71, %73 : vector<16x128xf32>
    %cst = arith.constant dense<0.000000e+00> : vector<16xf32>
    %75 = vector.multi_reduction <add>, %74, %cst [1] : vector<16x128xf32> to vector<16xf32>
    %76 = vector.shape_cast %75 : vector<16xf32> to vector<16x1xf32>
    %cst_35 = arith.constant 2.500000e-01 : f32
    %77 = vector.broadcast %cst_35 : f32 to vector<16x1xf32>
    %78 = arith.mulf %76, %77 : vector<16x1xf32>
    %79 = vector.broadcast %78 : vector<16x1xf32> to vector<16x128xf32>
    %80 = arith.subf %74, %79 : vector<16x128xf32>
    %81 = arith.mulf %80, %80 : vector<16x128xf32>
    %cst_36 = arith.constant dense<0.000000e+00> : vector<16xf32>
    %82 = vector.multi_reduction <add>, %81, %cst_36 [1] : vector<16x128xf32> to vector<16xf32>
    %83 = vector.shape_cast %82 : vector<16xf32> to vector<16x1xf32>
    %cst_37 = arith.constant 2.500000e-01 : f32
    %84 = vector.broadcast %cst_37 : f32 to vector<16x1xf32>
    %85 = arith.mulf %83, %84 : vector<16x1xf32>
    %cst_38 = arith.constant 3.100000e+01 : f32
    %86 = vector.broadcast %cst_38 : f32 to vector<16x1xf32>
    %87 = arith.mulf %86, %78 : vector<16x1xf32>
    %88 = arith.mulf %87, %78 : vector<16x1xf32>
    %89 = arith.subf %85, %88 : vector<16x1xf32>
    %cst_39 = arith.constant 9.99999974E-6 : f32
    %90 = vector.broadcast %cst_39 : f32 to vector<16x1xf32>
    %91 = arith.addf %89, %90 : vector<16x1xf32>
    %92 = math.rsqrt %91 : vector<16x1xf32>
    %93 = vector.broadcast %92 : vector<16x1xf32> to vector<16x128xf32>
    %94 = arith.mulf %80, %93 : vector<16x128xf32>
    %c0_40 = arith.constant 0 : index
    %c0_41 = arith.constant 0 : index
    %95 = vector.load %arg5[%c0_40, %c0_41] : memref<1x128xf32, #tpu.memory_space<vmem>>, vector<1x128xf32>
    %96 = vector.broadcast %95 : vector<1x128xf32> to vector<16x128xf32>
    %97 = arith.mulf %94, %96 : vector<16x128xf32>
    %c0_42 = arith.constant 0 : index
    %c0_43 = arith.constant 0 : index
    %98 = vector.load %arg6[%c0_42, %c0_43] : memref<1x128xf32, #tpu.memory_space<vmem>>, vector<1x128xf32>
    %99 = vector.broadcast %98 : vector<1x128xf32> to vector<16x128xf32>
    %100 = arith.addf %97, %99 : vector<16x128xf32>
    %101 = arith.truncf %100 : vector<16x128xf32> to vector<16x128xbf16>
    %c0_44 = arith.constant 0 : index
    %c0_45 = arith.constant 0 : index
    %102 = vector.load %arg7[%c0_44, %c0_45] : memref<128x128xbf16, #tpu.memory_space<vmem>>, vector<128x128xbf16>
    %cst_46 = arith.constant dense<0.000000e+00> : vector<16x128xf32>
    %103 = tpu.matmul %101, %102, %cst_46 {dimension_numbers = #tpu.dot_dimension_numbers<[1], [0], [0], [1], [0, 0, 1, 1], [], []>} : vector<16x128xbf16>, vector<128x128xbf16>, vector<16x128xf32> -> vector<16x128xf32>
    %c0_47 = arith.constant 0 : index
    %c0_48 = arith.constant 0 : index
    %104 = vector.load %arg8[%c0_47, %c0_48] : memref<1x128xf32, #tpu.memory_space<vmem>>, vector<1x128xf32>
    %105 = vector.broadcast %104 : vector<1x128xf32> to vector<16x128xf32>
    %106 = arith.addf %103, %105 : vector<16x128xf32>
    %cst_49 = arith.constant 5.000000e-01 : f32
    %107 = vector.broadcast %cst_49 : f32 to vector<16x128xf32>
    %108 = arith.mulf %107, %106 : vector<16x128xf32>
    %cst_50 = arith.constant 4.471500e-02 : f32
    %109 = vector.broadcast %cst_50 : f32 to vector<16x128xf32>
    %110 = arith.mulf %109, %106 : vector<16x128xf32>
    %111 = arith.mulf %110, %106 : vector<16x128xf32>
    %112 = arith.mulf %111, %106 : vector<16x128xf32>
    %113 = arith.addf %106, %112 : vector<16x128xf32>
    %cst_51 = arith.constant 0.797884583 : f32
    %114 = vector.broadcast %cst_51 : f32 to vector<16x128xf32>
    %115 = arith.mulf %114, %113 : vector<16x128xf32>
    %116 = math.tanh %115 : vector<16x128xf32>
    %cst_52 = arith.constant 1.000000e+00 : f32
    %117 = vector.broadcast %cst_52 : f32 to vector<16x128xf32>
    %118 = arith.addf %117, %116 : vector<16x128xf32>
    %119 = arith.mulf %108, %118 : vector<16x128xf32>
    %120 = arith.truncf %119 : vector<16x128xf32> to vector<16x128xbf16>
    %c0_53 = arith.constant 0 : index
    %c0_54 = arith.constant 0 : index
    %121 = vector.load %arg9[%c0_53, %c0_54] : memref<128x128xbf16, #tpu.memory_space<vmem>>, vector<128x128xbf16>
    %cst_55 = arith.constant dense<0.000000e+00> : vector<16x128xf32>
    %122 = tpu.matmul %120, %121, %cst_55 {dimension_numbers = #tpu.dot_dimension_numbers<[1], [0], [0], [1], [0, 0, 1, 1], [], []>} : vector<16x128xbf16>, vector<128x128xbf16>, vector<16x128xf32> -> vector<16x128xf32>
    %c0_56 = arith.constant 0 : index
    %c0_57 = arith.constant 0 : index
    %123 = vector.load %arg10[%c0_56, %c0_57] : memref<1x128xf32, #tpu.memory_space<vmem>>, vector<1x128xf32>
    %124 = vector.broadcast %123 : vector<1x128xf32> to vector<16x128xf32>
    %125 = arith.addf %122, %124 : vector<16x128xf32>
    %c0_i32_58 = arith.constant 0 : i32
    %c0_i32_59 = arith.constant 0 : i32
    %126 = tpu.memref_slice %arg12[%2, %c0_i32_58, %c0_i32_59] : memref<2x32x128xf32, #tpu.memory_space<vmem>> -> memref<1x32x128xf32, #tpu.memory_space<vmem>>
    %127 = tpu.memref_squeeze %126 : memref<1x32x128xf32, #tpu.memory_space<vmem>> -> memref<32x128xf32, #tpu.memory_space<vmem>>
    %c8_60 = arith.constant 8 : index
    %c0_61 = arith.constant 0 : index
    %128 = vector.load %127[%c8_60, %c0_61] : memref<32x128xf32, #tpu.memory_space<vmem>>, vector<16x128xf32>
    %129 = arith.addf %125, %128 : vector<16x128xf32>
    %c0_62 = arith.constant 0 : index
    %c0_63 = arith.constant 0 : index
    %c0_64 = arith.constant 0 : index
    %130 = vector.load %arg11[%c0_62, %c0_63, %c0_64] : memref<1x16x128xf32, #tpu.memory_space<vmem>>, vector<1x16x128xf32>
    %131 = vector.shape_cast %130 : vector<1x16x128xf32> to vector<16x128xf32>
    %132 = vector.shape_cast %129 : vector<16x128xf32> to vector<1x16x128xf32>
    tpu.vector_store %arg11[%c0_62, %c0_63, %c0_64], %132 {strides = array<i32>} : memref<1x16x128xf32, #tpu.memory_space<vmem>>, vector<1x16x128xf32>,
    return
  }
  func.func @transform_1(%arg0: i32, %arg1: i32) -> (i32, i32) {
    %c0_i32 = arith.constant 0 : i32
    %c0_i32_0 = arith.constant 0 : i32
    %c0_i32_1 = arith.constant 0 : i32
    return %c0_i32, %c0_i32_0 : i32, i32
  }
  func.func @transform_2(%arg0: i32, %arg1: i32) -> (i32, i32) {
    %c0_i32 = arith.constant 0 : i32
    %c0_i32_0 = arith.constant 0 : i32
    %c0_i32_1 = arith.constant 0 : i32
    return %c0_i32, %c0_i32_0 : i32, i32
  }
  func.func @transform_3(%arg0: i32, %arg1: i32) -> (i32, i32) {
    %c0_i32 = arith.constant 0 : i32
    %c0_i32_0 = arith.constant 0 : i32
    %c0_i32_1 = arith.constant 0 : i32
    return %c0_i32, %c0_i32_0 : i32, i32
  }
  func.func @transform_4(%arg0: i32, %arg1: i32) -> (i32, i32) {
    %c0_i32 = arith.constant 0 : i32
    %c0_i32_0 = arith.constant 0 : i32
    %c0_i32_1 = arith.constant 0 : i32
    return %c0_i32, %c0_i32_0 : i32, i32
  }
  func.func @transform_5(%arg0: i32, %arg1: i32) -> (i32, i32) {
    %c0_i32 = arith.constant 0 : i32
    %c0_i32_0 = arith.constant 0 : i32
    %c0_i32_1 = arith.constant 0 : i32
    return %c0_i32, %c0_i32_0 : i32, i32
  }
  func.func @transform_6(%arg0: i32, %arg1: i32) -> (i32, i32) {
    %c0_i32 = arith.constant 0 : i32
    %c0_i32_0 = arith.constant 0 : i32
    %c0_i32_1 = arith.constant 0 : i32
    return %c0_i32, %c0_i32_0 : i32, i32
  }
  func.func @transform_7(%arg0: i32, %arg1: i32) -> (i32, i32) {
    %c0_i32 = arith.constant 0 : i32
    %c0_i32_0 = arith.constant 0 : i32
    %c0_i32_1 = arith.constant 0 : i32
    return %c0_i32, %c0_i32_0 : i32, i32
  }
  func.func @transform_8(%arg0: i32, %arg1: i32) -> (i32, i32) {
    %c0_i32 = arith.constant 0 : i32
    %c0_i32_0 = arith.constant 0 : i32
    %c0_i32_1 = arith.constant 0 : i32
    return %c0_i32, %c0_i32_0 : i32, i32
  }
  func.func @transform_9(%arg0: i32, %arg1: i32) -> (i32, i32, i32) {
    %c0_i32 = arith.constant 0 : i32
    %c0_i32_0 = arith.constant 0 : i32
    return %arg0, %arg1, %c0_i32 : i32, i32, i32
  }
}

</mosaic_0001>

<bundles_post_ra>
// kernel: tpu_custom_call.1
= control target key start
LH: loop header
LB: loop body
LE: loop exit
PB: predicated region body
PF: predicated region fallthrough
CT: control target
= control target key end

     0   :  { %s1826_s0 = inlined_call_operand.hbm [shape: f32[2,32,128], index: 0, kind: input, shape index: {}]   ;;  %s1827_s1 = inlined_call_operand.hbm [shape: f32[7,128], index: 1, kind: input, shape index: {}]   ;;  %s1828_s2 = inlined_call_operand.vmem [shape: f32[1,128], index: 2, kind: input, shape index: {}]   ;;  %s1829_s3 = inlined_call_operand.vmem [shape: f32[1,128], index: 3, kind: input, shape index: {}]   ;;  %s1830_s4 = inlined_call_operand.vmem [shape: f32[1,128], index: 4, kind: input, shape index: {}]   ;;  %s1831_s5 = inlined_call_operand.hbm [shape: bf16[128,128], index: 5, kind: input, shape index: {}]   ;;  %s1832_s6 = inlined_call_operand.vmem [shape: f32[1,128], index: 6, kind: input, shape index: {}]   ;;  %s1833_s7 = inlined_call_operand.hbm [shape: bf16[128,128], index: 7, kind: input, shape index: {}]   ;;  %s1834_s8 = inlined_call_operand.vmem [shape: f32[1,128], index: 8, kind: input, shape index: {}]   ;;  %s1835_s9 = inlined_call_operand.hbm [shape: f32[2,16,128], index: 9, kind: output, shape index: {}]  }
   0x1   :  { %1849 = sst [smem:[#allocation27_spill]] %s1827_s1 }
   0x2   :  { %14 = vsyncpa [#allocation5], 0 }
   0x3   :  { %15 = vsyncpa [#allocation8], 0 }
   0x4   :  { %16 = vsyncpa [#allocation6], 0 }
   0x5   :  { %18 = vsyncpa [#allocation6 + $0x1], 0  ;;  %s1467_s30 = smov 0   ;;  %s1469_s10 = smov 0  }
   0x6   :  { %s1471_s11 = smov 0   ;;  %s1473_s12 = smov 0  }
   0x7   :  { %s1475_s13 = smov 0   ;;  %s1477_s14 = smov 0  }
   0x8 LB: > { %1850 = sst [smem:[#allocation21_spill]] %s1384_s30  ;;  %s940_s15 = sadd.s32 4294967295, %s1404_s14   ;;  %s1404_s14 = sphi %s1477_s14, %s24_s14   ;;  %s1400_s13 = sphi %s1475_s13, %s1877_s13   ;;  %s1396_s12 = sphi %s1473_s12, %s1876_s12   ;;  %s1392_s11 = sphi %s1471_s11, %s1875_s11   ;;  %s1388_s10 = sphi %s1469_s10, %s1879_s10   ;;  %s1384_s30 = sphi %s1467_s30, %s1878_s30  }
   0x9   : > { %1851 = sst [smem:[#allocation22_spill]] %s1392_s11  ;;  %s941_s16 = sadd.s32 4294967294, %s1404_s14  }
   0xa   : > { %1852 = sst [smem:[#allocation23_spill]] %s1400_s13  ;;  %s36_s17 = sadd.s32 1, %s1400_s13 }
   0xb   : > { %s213_s18 = sadd.s32 1, %s1392_s11  ;;  %p38_p0 = scmp.ge.s32.totalorder %s36_s17, 2 }
   0xc   : > { %p223_p1 = scmp.ne.s32.totalorder %s1392_s11, %s1388_s10  ;;  %p224_p2 = scmp.eq.s32.totalorder %s940_s15, 1 }
   0xd   : > { %p229_p3 = scmp.ne.s32.totalorder %s1388_s10, %s1384_s30  ;;  %s1881_s17 = smov (%p38_p0, %s36_s17), 0 }
   0xe   : > { %1853 = sst [smem:[#allocation24_spill]] %s1881_s17  ;;  %p1507_p4 = por %p224_p2, %p223_p1 }
   0xf   : > { %p230_p5 = scmp.eq.s32.totalorder %s941_s16, 1  ;;  %s208_s20 = ssub.s32 %s1400_s13, %s1881_s17 }
  0x10   : > { %s1854_s19 = scalar_select %p1507_p4, 1, 0 }
  0x11   : > { %p942_p6 = scmp.ge.s32.totalorder %s1404_s14, 1  ;;  %p211_p7 = scmp.eq.s32.totalorder %s208_s20, 0 }
  0x12   : > { %p1514_p8 = por %p230_p5, %p229_p3  ;;  %p237_p9 = scmp.lt.s32.totalorder %s1404_s14, 3 }
  0x13   : > { %s1520_s22 = scalar_select %p211_p7, %s1392_s11, %s213_s18  }
  0x14   : > { %s1855_s21 = scalar_select %p1514_p8, 1, 0 }
  0x15   : > { %1857 = sst [smem:[#allocation26_spill]] %s1520_s22  ;;  %p1522_p10 = pnand %p942_p6, %p237_p9 }
  0x16   : > { %1856 = sst [smem:[#allocation25_spill]] %s1855_s21  ;;  %p1526_p11 = scmp.eq.s32.totalorder %s940_s15, 0 }
  0x17   : > { %s1858_s23 = scalar_select %p1522_p10, 1, 0 }
  0x18   : > { %s1859_s24 = scalar_select %p1526_p11, 1, 0 }
  0x19   : > { %p1072_p12 = pneg %p1522_p10  ;;  %s1406_s25 = smov [#allocation7]  }
  0x1a   : > { %s269_s26 = sshll.u32 %s1406_s25, 4  ;;  %s1407_s28 = smov [#allocation4]   ;;  %s270_s26 = int_to_ptr.vmem [resolvable:$true] %s269_s26 }
  0x1b   : > { %p1534_p13 = pnand %p1526_p11, %p1072_p12  ;;  %s250_s29 = sshll.u32 %s1407_s28, 4  ;;  %s251_s29 = int_to_ptr.vmem [resolvable:$true] %s250_s29 }
  0x1c   : > { %s1176_s15 = scalar_lea.hbm %s1831_s5, 1024 }
  0x1d   : > { %p1177_p0 = scmp.ne.s32.totalorder %s1831_s5, %s1176_s15  ;;  %p1546_p1 = pneg %p1534_p13 }
  0x1e   : > { %p1183_p5 = scmp.lt.u32.totalorder %s1176_s15, %s1831_s5 }
  0x1f   : > { %p1179_p2 = pnand %p1546_p1, %p1177_p0 }
  0x21   : > { %p1180_p3 = pneg %p1179_p2 }
  0x23   : > { %p1185_p6 = pnand %p1183_p5, %p1180_p3 }
  0x25   : > { %1188 = shalt.err (!%p1185_p6)
}
  0x26   : > { %s1189_s28 = scalar_lea.vmem %s270_s26, 1024  ;;  %p1197_p8 = scmp.lt.s32.totalorder %s270_s26, %s270_s26 }
  0x27   : > { %p1190_p7 = scmp.ne.s32.totalorder %s270_s26, %s1189_s28  ;;  %p1198_p4 = scmp.lt.s32.totalorder %s1189_s28, %s1189_s28 }
  0x29   : > { %p1192_p9 = pnand %p1190_p7, %p1546_p1  ;;  %p1199_p11 = por %p1198_p4, %p1197_p8 }
  0x2b   : > { %p1193_p12 = pneg %p1192_p9 }
  0x2d   : > { %p1200_p10 = pnand %p1199_p11, %p1193_p12 }
  0x2f   : > { %1203 = shalt.err (!%p1200_p10)
}
  0x30   : > { %s1845_s17 = smov 64   ;;  %s1409_s16 = smov 4  }
  0x31   : > { %1078 = dma.hbm_to_vmem [thread:$0]  (!%p1534_p13), %s1831_s5, 1024, %s270_s26, [#allocation8], %s1845_s17, %s1845_s17, %s1409_s16  }
  0x32   : > { %s1862_s1 = sld [smem:[#allocation27_spill]] }
  0x38   : > { %s1204_s20 = scalar_lea.hbm %s1862_s1, 128 }
  0x39   : > { %p1205_p4 = scmp.ne.s32.totalorder %s1862_s1, %s1204_s20  ;;  %p1211_p11 = scmp.lt.u32.totalorder %s1204_s20, %s1862_s1 }
  0x3b   : > { %p1207_p8 = pnand %p1205_p4, %p1546_p1 }
  0x3d   : > { %p1208_p10 = pneg %p1207_p8 }
  0x3f   : > { %p1213_p0 = pnand %p1211_p11, %p1208_p10 }
  0x41   : > { %1216 = shalt.err (!%p1213_p0)
}
  0x42   : > { %s1217_s13 = scalar_lea.vmem %s251_s29, 128  ;;  %p1225_p6 = scmp.lt.s32.totalorder %s251_s29, %s251_s29 }
  0x43   : > { %p1218_p2 = scmp.ne.s32.totalorder %s251_s29, %s1217_s13  ;;  %p1226_p7 = scmp.lt.s32.totalorder %s1217_s13, %s1217_s13 }
  0x45   : > { %p1220_p3 = pnand %p1218_p2, %p1546_p1  ;;  %p1227_p9 = por %p1226_p7, %p1225_p6 }
  0x47   : > { %p1221_p5 = pneg %p1220_p3 }
  0x49   : > { %p1228_p12 = pnand %p1227_p9, %p1221_p5 }
  0x4b   : > { %1231 = shalt.err (!%p1228_p12)
}
  0x4c   : > { %1075 = dma.hbm_to_vmem [thread:$0]  (!%p1534_p13), %s1862_s1, 128, %s251_s29, [#allocation5]  }
  0x4d   : > { %s1410_s30 = smov [#allocation9]   ;;  %s1232_s15 = scalar_lea.hbm %s1833_s7, 1024 }
  0x4e   : > { %s285_s21 = sshll.u32 %s1410_s30, 4  ;;  %p1233_p4 = scmp.ne.s32.totalorder %s1833_s7, %s1232_s15  ;;  %s286_s21 = int_to_ptr.vmem [resolvable:$true] %s285_s21 }
  0x4f   : > { %p1239_p11 = scmp.lt.u32.totalorder %s1232_s15, %s1833_s7 }
  0x50   : > { %p1235_p8 = pnand %p1233_p4, %p1546_p1 }
  0x52   : > { %p1236_p10 = pneg %p1235_p8 }
  0x54   : > { %p1241_p0 = pnand %p1239_p11, %p1236_p10 }
  0x56   : > { %1244 = shalt.err (!%p1241_p0)
}
  0x57   : > { %s1245_s29 = scalar_lea.vmem %s286_s21, 1024  ;;  %p1253_p6 = scmp.lt.s32.totalorder %s286_s21, %s286_s21 }
  0x58   : > { %p1246_p2 = scmp.ne.s32.totalorder %s286_s21, %s1245_s29  ;;  %p1254_p7 = scmp.lt.s32.totalorder %s1245_s29, %s1245_s29 }
  0x5a   : > { %p1248_p3 = pnand %p1246_p2, %p1546_p1  ;;  %p1255_p9 = por %p1254_p7, %p1253_p6 }
  0x5c   : > { %p1249_p5 = pneg %p1248_p3 }
  0x5e   : > { %p1256_p12 = pnand %p1255_p9, %p1249_p5 }
  0x60   : > { %1259 = shalt.err (!%p1256_p12)
}
  0x61   : > { %s1863_s11 = smov 64   ;;  %p1864_p4 = scmp.ne.s32.totalorder %s1858_s23, 0 }
  0x62   : > { %1081 = dma.hbm_to_vmem [thread:$0]  (!%p1534_p13), %s1833_s7, 1024, %s286_s21, [#allocation8], %s1863_s11, %s1863_s11, %s1409_s16  }
  0x63   : > { %304 = sbr.rel (%p1864_p4) target bundleno = 990 (0x3de), region = 52  ;;  %p1865_p1 = scmp.ne.s32.totalorder (!%p1864_p4), %s1859_s24, 0 }
  0x6a   : > { %1369 = dma.done.wait (%p1865_p1), [#allocation5], 128  }
  0x6b   : > { %1371 = vsyncadd (%p1865_p1), [#allocation5], 4294967168 }
  0x6c   : > { %1373 = dma.done.wait (%p1865_p1), [#allocation8], 2048  }
  0x6d   : > { %1375 = vsyncadd (%p1865_p1), [#allocation8], 4294965248  ;;  %s1846_s23 = sand.u32 1, %s1388_s10   ;;  %p344_p13 = scmp.lt.s32.totalorder %s1396_s12, 0 }
  0x6e   : > { %s1618_s27 = sshll.u32 %s1846_s23, 4  ;;  %s345_s25 = ssub.s32 0, %s1396_s12 }
  0x6f   : > { %s951_s16 = smin.u32 %s1396_s12, %s345_s25  ;;  %p1092_p8 = scmp.eq.s32.totalorder %s1396_s12, 0 }
  0x70   : > { %s347_s30 = sand.u32 1, %s951_s16   ;;  %s989_s24 = sshll.u32 %s1396_s12, 9 }
  0x71   : > { %s348_s21 = ssub.s32 0, %s347_s30  ;;  %s1631_s15 = scalar_lea.hbm %s1826_s0, %s989_s24 }
  0x72   : > { %s1883_s21 = smov (!%p344_p13, %s348_s21), %s347_s30  ;;  %s1260_s11 = scalar_lea.hbm %s1631_s15, 512 }
  0x73   : > { %s955_s20 = sshll.u32 %s1883_s21, 5  ;;  %s366_s29 = scalar_lea.sflag [#allocation3], %s1883_s21 }
  0x74   : > { %s1634_s28 = scalar_lea.vmem [#allocation2], %s955_s20  ;;  %p1261_p10 = scmp.ne.s32.totalorder %s1631_s15, %s1260_s11 }
  0x75   : > { %s374_s13 = sshll.u32 %s1634_s28, 4  ;;  %s1848_s25 = scalar_lea.hbm %s1826_s0, 1024  ;;  %s375_s13 = int_to_ptr.vmem [resolvable:$true] %s374_s13 }
  0x76   : > { %p1262_p11 = pnand %p1261_p10, %p1092_p8  ;;  %p1265_p2 = scmp.lt.u32.totalorder %s1631_s15, %s1826_s0 }
  0x77   : > { %p1266_p3 = scmp.lt.u32.totalorder %s1848_s25, %s1260_s11  ;;  %p1268_p6 = scmp.lt.u32.totalorder %s1260_s11, %s1631_s15 }
  0x78   : > { %p1263_p0 = pneg %p1262_p11 }
  0x79   : > { %p1267_p5 = por %p1266_p3, %p1265_p2 }
  0x7b   : > { %p1269_p7 = por %p1268_p6, %p1267_p5 }
  0x7d   : > { %p1270_p9 = pnand %p1269_p7, %p1263_p0 }
  0x7f   : > { %1273 = shalt.err (!%p1270_p9)  }
  0x80   : > { %s1274_s20 = scalar_lea.vmem %s375_s13, 512  ;;  %s1411_s17 = smov [#allocation2]  }
  0x81   : > { %p1275_p12 = scmp.ne.s32.totalorder %s375_s13, %s1274_s20  ;;  %s1278_s26 = sshll.u32 %s1411_s17, 4  ;;  %s1656_s26 = int_to_ptr.vmem [resolvable:$false] %s1278_s26 }
  0x82   : > { %s1847_s16 = scalar_lea.vmem %s1656_s26, 1024  ;;  %p1281_p13 = scmp.lt.s32.totalorder %s375_s13, %s1656_s26 }
  0x83   : > { %p1276_p4 = pnand %p1275_p12, %p1092_p8  ;;  %p1282_p10 = scmp.lt.s32.totalorder %s1847_s16, %s1274_s20 }
  0x85   : > { %p1277_p1 = pneg %p1276_p4  ;;  %p1283_p11 = por %p1282_p10, %p1281_p13 }
  0x87   : > { %p1284_p0 = pnand %p1283_p11, %p1277_p1 }
  0x89   : > { %1287 = shalt.err (!%p1284_p0)  }
  0x8a   : > { %1067 = dma.hbm_to_vmem [thread:$0]  (%p1092_p8), %s1631_s15, 512, %s375_s13, %s366_s29 }
  0x8b   : > { %s1666_s11 = scalar_lea.vmem [#allocation10], %s1618_s27 }
  0x8c   : > { %1376 = dma.done.wait %s366_s29, 512 }
  0x8d   : > { %1377 = vsyncadd %s366_s29, 4294966784  ;;  %s384_s30 = sadd.s32 1, %s1396_s12  ;;  %s394_s22 = ssub.s32 1, %s1883_s21  ;;  %v433_v0 = vlaneseq  ;;  %v1412_v1 = vmov 0.0  }
  0x8e   : > { %p1670_p2 = scmp.lt.s32.totalorder %s384_s30, 2  ;;  %1014 = vmatprep.subr.bf16.mxu0 %v1412_v1  ;;  %1034 = vmatprep.subr.bf16.mxu1 %v1412_v1  ;;  %s995_s27 = sadd.s32 512, %s989_s24 }
  0x8f   : > { %s960_s15 = sshll.u32 %s394_s22, 5  ;;  %s404_s20 = scalar_lea.hbm %s1826_s0, %s995_s27  ;;  %v1681_v2 = vshrl.u32 %v433_v0, 7 }
  0x90   : > { %s406_s21 = scalar_lea.vmem [#allocation2], %s960_s15  ;;  %s407_s30 = scalar_lea.sflag [#allocation3], %s394_s22 }
  0x91   : > { %s415_s17 = sshll.u32 %s406_s21, 4  ;;  %s1288_s23 = scalar_lea.hbm %s404_s20, 512  ;;  %s416_s17 = int_to_ptr.vmem [resolvable:$true] %s415_s17 }
  0x92   : > { %p1289_p8 = scmp.ne.s32.totalorder %s404_s20, %s1288_s23  ;;  %p1293_p6 = scmp.lt.u32.totalorder %s404_s20, %s1826_s0 }
  0x93   : > { %s1867_s13 = scalar_lea.hbm %s1826_s0, 1024  ;;  %p1296_p12 = scmp.lt.u32.totalorder %s1288_s23, %s404_s20 }
  0x94   : > { %p1290_p3 = pnand %p1289_p8, %p1670_p2  ;;  %p1294_p7 = scmp.lt.u32.totalorder %s1867_s13, %s1288_s23 }
  0x96   : > { %p1291_p5 = pneg %p1290_p3  ;;  %p1295_p9 = por %p1294_p7, %p1293_p6 }
  0x98   : > { %p1297_p4 = por %p1296_p12, %p1295_p9 }
  0x9a   : > { %p1298_p1 = pnand %p1297_p4, %p1291_p5 }
  0x9c   : > { %1301 = shalt.err (!%p1298_p1)  }
  0x9d   : > { %s1302_s22 = scalar_lea.vmem %s416_s17, 512  ;;  %p1309_p0 = scmp.lt.s32.totalorder %s416_s17, %s1656_s26 }
  0x9e   : > { %p1303_p13 = scmp.ne.s32.totalorder %s416_s17, %s1302_s22  ;;  %s1868_s25 = scalar_lea.vmem %s1656_s26, 1024 }
  0x9f   : > { %p1310_p8 = scmp.lt.s32.totalorder %s1868_s25, %s1302_s22 }
  0xa0   : > { %p1304_p10 = pnand %p1303_p13, %p1670_p2 }
  0xa1   : > { %p1311_p3 = por %p1310_p8, %p1309_p0 }
  0xa2   : > { %p1305_p11 = pneg %p1304_p10 }
  0xa4   : > { %p1312_p6 = pnand %p1311_p3, %p1305_p11 }
  0xa6   : > { %1315 = shalt.err (!%p1312_p6)  }
  0xa7   : > { %1069 = dma.hbm_to_vmem [thread:$0]  (%p1670_p2), %s404_s20, 512, %s416_s17, %s407_s30  ;;  %v435_v3 = vsub.s32 0, %v1681_v2  ;;  %v443_v4 = vsub.s32 1, %v1681_v2  ;;  %v430_v8 = vld [vmem:[#allocation4] sm:$0x7f]  ;;  %v453_v9 = vsub.s32 2, %v1681_v2 }
  0xa8   : > { %v1702_v5 = vld [vmem:[%s1634_s28] sm:$0xff]  ;;  %v1705_v6 = vld [vmem:[%s1634_s28 + $0x8] sm:$0xff]  ;;  %v425_v7 = vld [vmem:[%s1634_s28 + $0x10] sm:$0xff]  ;;  %v463_v10 = vsub.s32 3, %v1681_v2  ;;  %v473_v11 = vsub.s32 4, %v1681_v2  ;;  %v483_v16 = vsub.s32 5, %v1681_v2 }
  0xa9   : > { %426 = vst [vmem:[%s1634_s28 + $0x8] sm:$0xff] %v1702_v5  ;;  %427 = vst [vmem:[%s1634_s28 + $0x10] sm:$0xff] %v1705_v6  ;;  %v436_v12 = vrot.slane %v430_v8, %v435_v3  ;;  %v444_v13 = vrot.slane %v430_v8, %v443_v4  ;;  %v454_v14 = vrot.slane %v430_v8, %v453_v9  ;;  %v493_v20 = vsub.s32 6, %v1681_v2  ;;  %v961_v56 = vld [vmem:[%s1828_s2] ss:$0 sm:$0xff]  ;;  %v1152_v62 = vld [vmem:[#allocation7] sm:$0xff]  }
  0xaa   : > { %429 = vst [vmem:[%s1634_s28] sm:$0xff] %v1412_v1  ;;  %428 = vst [vmem:[%s1634_s28 + $0x18] sm:$0xff] %v425_v7  ;;  %v464_v15 = vrot.slane %v430_v8, %v463_v10  ;;  %v474_v25 = vrot.slane %v430_v8, %v473_v11  ;;  %v484_v27 = vrot.slane %v430_v8, %v483_v16  ;;  %1015 = vmatpush3.bf16.msra.mxu0 %v1152_v62  ;;  %v1153_v10 = vld [vmem:[#allocation7 + $0x8] sm:$0xff]   ;;  %v1154_v11 = vld [vmem:[#allocation7 + $0x10] sm:$0xff]   ;;  %vm1413_vm0 = vmmov 0   ;;  %s993_s21 = sshll.u32 %s1396_s12, 8  ;;  %s818_s17 = sshll.u32 %s1666_s11, 4  ;;  %s1773_s17 = int_to_ptr.vmem [resolvable:$true] %s818_s17 }
  0xab   : > { %v494_v36 = vrot.slane %v430_v8, %v493_v20  ;;  %1016 = vmatprep.subr.bf16.mxu0 %v1412_v1  ;;  %1030 = vmatprep.mubr.msk.bf16.mxu0 %vm1413_vm0, %v1412_v1  ;;  %v1159_v16 = vld [vmem:[#allocation7 + $0x38] sm:$0xff]   ;;  %s1771_s13 = scalar_lea.hbm %s1835_s9, %s993_s21  ;;  %s1869_s12 = sand.u32 1, %s1388_s10  }
  0xac   : > { %v465_v26 = vmul.f32 %v464_v15, %v1702_v5  ;;  %v466_v41 = vmul.f32 %v464_v15, %v1705_v6  ;;  %1050 = vmatprep.mubr.msk.bf16.mxu1 %vm1413_vm0, %v1412_v1  ;;  %v1158_v15 = vld [vmem:[#allocation7 + $0x30] sm:$0xff]   ;;  %s1780_s22 = scalar_lea.sflag [#allocation6], %s1869_s12  ;;  %s1316_s25 = scalar_lea.vmem %s1773_s17, 256 }
  0xad   : > { %p1317_p2 = scmp.ne.s32.totalorder %s1773_s17, %s1316_s25  ;;  %p1870_p5 = scmp.ne.s32.totalorder %s1854_s19, 0 }
  0xae   : > { %1017 = vmatpush3.bf16.msra.mxu0 %v1153_v10  ;;  %s1414_s1 = smov [#allocation10]  }
  0xaf   : > { %1018 = vmatprep.subr.bf16.mxu0 %v1412_v1  ;;  %p1318_p7 = pnand %p1317_p2, %p1870_p5  ;;  %s1320_s23 = sshll.u32 %s1414_s1, 4  ;;  %s1321_s23 = int_to_ptr.vmem [resolvable:$false] %s1320_s23 }
  0xb0   : > { %v469_v24 = vld [vmem:[%s1634_s28 + $0x9] sm:$0xff]  ;;  %p1323_p12 = scmp.lt.s32.totalorder %s1773_s17, %s1321_s23 }
  0xb1   : > { %v431_v17 = vld [vmem:[%s1634_s28 + $0x5] sm:$0xff]  ;;  %v432_v28 = vld [vmem:[%s1634_s28 + $0xd] sm:$0xff]  ;;  %v475_v39 = vmul.f32 %v474_v25, %v469_v24  ;;  %p1319_p9 = pneg %p1318_p7 }
  0xb2   : > { %v439_v18 = vld [vmem:[%s1634_s28 + $0x6] sm:$0xff]  ;;  %v437_v21 = vmul.f32 %v436_v12, %v431_v17  ;;  %v440_v29 = vld [vmem:[%s1634_s28 + $0xe] sm:$0xff]  ;;  %v438_v32 = vmul.f32 %v436_v12, %v432_v28  ;;  %1019 = vmatpush3.bf16.msra.mxu0 %v1154_v11 }
  0xb3   : > { %v449_v19 = vld [vmem:[%s1634_s28 + $0x7] sm:$0xff]  ;;  %v445_v22 = vmul.f32 %v444_v13, %v439_v18  ;;  %v450_v30 = vld [vmem:[%s1634_s28 + $0xf] sm:$0xff]  ;;  %v446_v33 = vmul.f32 %v444_v13, %v440_v29  ;;  %1020 = vmatprep.subr.bf16.mxu0 %v1412_v1 }
  0xb4   : > { %v455_v23 = vmul.f32 %v454_v14, %v449_v19  ;;  %v456_v34 = vmul.f32 %v454_v14, %v450_v30  ;;  %v479_v35 = vld [vmem:[%s1634_s28 + $0xa] sm:$0xff]  ;;  %v480_v43 = vld [vmem:[%s1634_s28 + $0x12] sm:$0xff]  ;;  %v1155_v12 = vld [vmem:[#allocation7 + $0x18] sm:$0xff]  }
  0xb5   : > { %v447_v31 = vadd.f32 %v445_v22, %v437_v21  ;;  %v470_v37 = vld [vmem:[%s1634_s28 + $0x11] sm:$0xff]  ;;  %v448_v40 = vadd.f32 %v446_v33, %v438_v32  ;;  %v485_v45 = vmul.f32 %v484_v27, %v479_v35  ;;  %v486_v52 = vmul.f32 %v484_v27, %v480_v43  ;;  %v1156_v13 = vld [vmem:[#allocation7 + $0x20] sm:$0xff]   ;;  %v963_v35 = vld [vmem:[%s1830_s4] ss:$0 sm:$0xff] }
  0xb6   : > { %v489_v42 = vld [vmem:[%s1634_s28 + $0xb] sm:$0xff]  ;;  %v476_v47 = vmul.f32 %v474_v25, %v470_v37  ;;  %v490_v48 = vld [vmem:[%s1634_s28 + $0x13] sm:$0xff]  ;;  %1021 = vmatpush3.bf16.msra.mxu0 %v1155_v12  ;;  %v1163_v43 = vld [vmem:[#allocation9 + $0x18] sm:$0xff]   ;;  %s1322_s28 = scalar_lea.vmem %s1321_s23, 512 }
  0xb7   : > { %v457_v38 = vadd.f32 %v455_v23, %v447_v31  ;;  %v458_v46 = vadd.f32 %v456_v34, %v448_v40  ;;  %v495_v50 = vmul.f32 %v494_v36, %v489_v42  ;;  %v496_v55 = vmul.f32 %v494_v36, %v490_v48  ;;  %1022 = vmatprep.subr.bf16.mxu0 %v1412_v1  ;;  %v1157_v14 = vld [vmem:[#allocation7 + $0x28] sm:$0xff]   ;;  %v962_v31 = vld [vmem:[%s1829_s3] ss:$0 sm:$0xff]  ;;  %v1160_v40 = vld [vmem:[#allocation9] sm:$0xff]   ;;  %p1324_p4 = scmp.lt.s32.totalorder %s1322_s28, %s1316_s25 }
  0xb8   : > { %1035 = vmatpush3.bf16.msra.mxu1 %v1160_v40  ;;  %v1162_v42 = vld [vmem:[#allocation9 + $0x10] sm:$0xff]   ;;  %v964_v48 = vld [vmem:[%s1832_s6] ss:$0 sm:$0xff] }
  0xb9   : > { %v467_v44 = vadd.f32 %v465_v26, %v457_v38  ;;  %v468_v51 = vadd.f32 %v466_v41, %v458_v46  ;;  %1036 = vmatprep.subr.bf16.mxu1 %v1412_v1  ;;  %v1161_v41 = vld [vmem:[#allocation9 + $0x8] sm:$0xff]   ;;  %v1166_v46 = vld [vmem:[#allocation9 + $0x30] sm:$0xff]   ;;  %v973_v12 = vld [vmem:[%s1834_s8] ss:$0 sm:$0xff]  ;;  %p1325_p1 = por %p1324_p4, %p1323_p12 }
  0xba   : > { %1023 = vmatpush3.bf16.msra.mxu0 %v1156_v13 }
  0xbb   : > { %v477_v49 = vadd.f32 %v475_v39, %v467_v44  ;;  %v478_v54 = vadd.f32 %v476_v47, %v468_v51  ;;  %1024 = vmatprep.subr.bf16.mxu0 %v1412_v1  ;;  %v1164_v44 = vld [vmem:[#allocation9 + $0x20] sm:$0xff]   ;;  %v1167_v47 = vld [vmem:[#allocation9 + $0x38] sm:$0xff]   ;;  %p1326_p13 = pnand %p1325_p1, %p1319_p9 }
  0xbc   : > { %1037 = vmatpush3.bf16.msra.mxu1 %v1161_v41 }
  0xbd   : > { %v487_v53 = vadd.f32 %v485_v45, %v477_v49  ;;  %v488_v58 = vadd.f32 %v486_v52, %v478_v54  ;;  %1038 = vmatprep.subr.bf16.mxu1 %v1412_v1  ;;  %v1165_v45 = vld [vmem:[#allocation9 + $0x28] sm:$0xff]  }
  0xbe   : > { %1025 = vmatpush3.bf16.msra.mxu0 %v1157_v14 }
  0xbf   : > { %v497_v57 = vadd.f32 %v495_v50, %v487_v53  ;;  %v498_v60 = vadd.f32 %v496_v55, %v488_v58  ;;  %1026 = vmatprep.subr.bf16.mxu0 %v1412_v1 }
  0xc0   : > { %1039 = vmatpush3.bf16.msra.mxu1 %v1162_v42 }
  0xc1   : > { %v506_v59 = vadd.f32 %v961_v56, %v497_v57  ;;  %v507_v61 = vadd.f32 %v961_v56, %v498_v60  ;;  %1040 = vmatprep.subr.bf16.mxu1 %v1412_v1 }
  0xc2   : > { %1027 = vmatpush3.bf16.msra.mxu0 %v1158_v15 }
  0xc3   : > { %508 = vadd.xlane.f32.xlu0 %v506_v59  ;;  %1028 = vmatprep.subr.bf16.mxu0 %v1412_v1 }
  0xc4   : > { %1041 = vmatpush3.bf16.msra.mxu1 %v1163_v43 }
  0xc5   : > { %1042 = vmatprep.subr.bf16.mxu1 %v1412_v1 }
  0xc6   : > { %1029 = vmatpush3.bf16.msra.mxu0 %v1159_v16 }
  0xc7   : > { %510 = vadd.xlane.f32.xlu0 %v507_v61 }
  0xc8   : > { %1043 = vmatpush3.bf16.msra.mxu1 %v1164_v44 }
  0xc9   : > { %1044 = vmatprep.subr.bf16.mxu1 %v1412_v1 }
  0xcc   : > { %1045 = vmatpush3.bf16.msra.mxu1 %v1165_v45 }
  0xcd   : > { %1046 = vmatprep.subr.bf16.mxu1 %v1412_v1 }
  0xd0   : > { %1047 = vmatpush3.bf16.msra.mxu1 %v1166_v46 }
  0xd1   : > { %1048 = vmatprep.subr.bf16.mxu1 %v1412_v1 }
  0xd4   : > { %1049 = vmatpush3.bf16.msra.mxu1 %v1167_v47 }
 0x150   : > { %v509_v63 = vpop.xlane.xlu0 %508 }
 0x151   : > { %v512_v0 = vmul.f32 0.25, %v509_v63 }
 0x153   : > { %v514_v2 = vsub.f32 %v506_v59, %v512_v0  ;;  %v524_v17 = vmul.f32 31.0, %v512_v0 }
 0x154   : > { %v511_v3 = vpop.xlane.xlu0 %510 }
 0x155   : > { %v513_v4 = vmul.f32 0.25, %v511_v3  ;;  %v516_v7 = vmul.f32 %v514_v2, %v514_v2  ;;  %v526_v20 = vmul.f32 %v524_v17, %v512_v0 }
 0x157   : > { %518 = vadd.xlane.f32.xlu1 %v516_v7  ;;  %v515_v8 = vsub.f32 %v507_v61, %v513_v4  ;;  %v525_v19 = vmul.f32 31.0, %v513_v4 }
 0x159   : > { %v517_v9 = vmul.f32 %v515_v8, %v515_v8  ;;  %v527_v25 = vmul.f32 %v525_v19, %v513_v4 }
 0x15b   : > { %520 = vadd.xlane.f32.xlu1 %v517_v9 }
 0x1e4   : > { %v519_v18 = vpop.xlane.xlu1 %518 }
 0x1e5   : > { %v522_v21 = vmul.f32 0.25, %v519_v18 }
 0x1e7   : > { %v528_v22 = vsub.f32 %v522_v21, %v526_v20 }
 0x1e8   : > { %v521_v23 = vpop.xlane.xlu1 %520 }
 0x1e9   : > { %v530_v24 = vadd.f32 1e-05, %v528_v22  ;;  %v523_v26 = vmul.f32 0.25, %v521_v23 }
 0x1eb   : > { %1168 = vrsqrt.f32 %v530_v24  ;;  %v529_v27 = vsub.f32 %v523_v26, %v527_v25 }
 0x1ed   : > { %v531_v28 = vadd.f32 1e-05, %v529_v27 }
 0x1ef   : > { %1170 = vrsqrt.f32 %v531_v28 }
 0x1f5   : > { %v1169_v29 = vpop.eup %1168 }
 0x1f6   : > { %v534_v30 = vmul.f32 %v1169_v29, %v514_v2 }
 0x1f8   : > { %v543_v34 = vmul.f32 %v962_v31, %v534_v30 }
 0x1f9   : > { %v1171_v32 = vpop.eup %1170 }
 0x1fa   : > { %v535_v33 = vmul.f32 %v1171_v32, %v515_v8  ;;  %v552_v37 = vadd.f32 %v963_v35, %v543_v34 }
 0x1fc   : > { %v544_v36 = vmul.f32 %v962_v31, %v535_v33 }
 0x1fe   : > { %v553_v38 = vadd.f32 %v963_v35, %v544_v36 }
 0x200   : > { %v554_v39 = vpack.c.bf16 %v553_v38, %v552_v37 }
 0x202   : > { %1031 = vmatmul.mubr.bf16.vlgmr.msra.gmra.mrb[0].mxu0 %v554_v39 }
 0x2d5   : > { %v660_v49 = vpop.f32.mrb[0].mxu0 }
 0x2d6   : > { %v661_v50 = vadd.f32 %v964_v48, %v660_v49  ;;  %v1032_v51 = vpop.f32.mrb[1].mxu0 }
 0x2d7   : > { %v663_v52 = vpop.f32.mrb[2].mxu0 }
 0x2d8   : > { %v669_v53 = vmul.f32 0.044715, %v661_v50  ;;  %v664_v54 = vadd.f32 %v964_v48, %v663_v52  ;;  %v1033_v55 = vpop.f32.mrb[3].mxu0  ;;  %v667_v4 = vmul.f32 0.5, %v661_v50 }
 0x2da   : > { %v671_v56 = vmul.f32 %v669_v53, %v661_v50  ;;  %v670_v57 = vmul.f32 0.044715, %v664_v54  ;;  %v668_v7 = vmul.f32 0.5, %v664_v54 }
 0x2dc   : > { %v673_v58 = vmul.f32 %v671_v56, %v661_v50  ;;  %v672_v59 = vmul.f32 %v670_v57, %v664_v54 }
 0x2de   : > { %v674_v60 = vmul.f32 %v672_v59, %v664_v54  ;;  %v675_v61 = vadd.f32 %v673_v58, %v661_v50 }
 0x2e0   : > { %v676_v62 = vadd.f32 %v674_v60, %v664_v54  ;;  %v677_v1 = vmul.f32 0.7978846, %v675_v61 }
 0x2e2   : > { %v678_v63 = vmul.f32 0.7978846, %v676_v62  ;;  %1172 = vtanh.f32 %v677_v1 }
 0x2e4   : > { %1174 = vtanh.f32 %v678_v63 }
 0x2ec   : > { %v1173_v0 = vpop.eup %1172 }
 0x2ed   : > { %v681_v2 = vadd.f32 1.0, %v1173_v0 }
 0x2ee   : > { %v1175_v3 = vpop.eup %1174 }
 0x2ef   : > { %v682_v8 = vadd.f32 1.0, %v1175_v3  ;;  %v683_v9 = vmul.f32 %v681_v2, %v667_v4 }
 0x2f1   : > { %v684_v10 = vmul.f32 %v682_v8, %v668_v7 }
 0x2f3   : > { %v685_v11 = vpack.c.bf16 %v684_v10, %v683_v9 }
 0x2f5   : > { %1051 = vmatmul.mubr.bf16.vlgmr.msra.gmra.mrb[0].mxu1 %v685_v11 }
 0x3c8   : > { %v791_v13 = vpop.f32.mrb[0].mxu1 }
 0x3c9   : > { %v792_v14 = vadd.f32 %v973_v12, %v791_v13  ;;  %v1052_v15 = vpop.f32.mrb[1].mxu1 }
 0x3ca   : > { %v794_v16 = vpop.f32.mrb[2].mxu1 }
 0x3cb   : > { %v798_v17 = vadd.f32 %v792_v14, %v1702_v5  ;;  %v795_v18 = vadd.f32 %v973_v12, %v794_v16  ;;  %v1053_v19 = vpop.f32.mrb[3].mxu1 }
 0x3cd   : > { %800 = vst [vmem:[%s1666_s11] sm:$0xff] %v798_v17  ;;  %v799_v20 = vadd.f32 %v795_v18, %v1705_v6 }
 0x3cf   : > { %801 = vst [vmem:[%s1666_s11 + $0x8] sm:$0xff] %v799_v20 }
 0x3d0   : > { %1329 = shalt.err (!%p1326_p13)
}
 0x3d1   : > { %s1330_s11 = scalar_lea.hbm %s1771_s13, 256  ;;  %s1334_s18 = scalar_lea.hbm %s1835_s9, 512 }
 0x3d2   : > { %p1331_p10 = scmp.ne.s32.totalorder %s1771_s13, %s1330_s11  ;;  %p1335_p8 = scmp.lt.u32.totalorder %s1771_s13, %s1835_s9 }
 0x3d3   : > { %p1336_p3 = scmp.lt.u32.totalorder %s1334_s18, %s1330_s11  ;;  %p1338_p2 = scmp.lt.u32.totalorder %s1330_s11, %s1771_s13 }
 0x3d4   : > { %p1332_p11 = pnand %p1331_p10, %p1870_p5 }
 0x3d5   : > { %p1337_p6 = por %p1336_p3, %p1335_p8 }
 0x3d6   : > { %p1333_p0 = pneg %p1332_p11 }
 0x3d7   : > { %p1339_p7 = por %p1338_p2, %p1337_p6 }
 0x3d9   : > { %p1340_p9 = pnand %p1339_p7, %p1333_p0 }
 0x3db   : > { %1343 = shalt.err (!%p1340_p9)
}
 0x3dc   : > { %s1415_s29 = smov 128   ;;  %s1416_s20 = smov 8  }
 0x3dd   : > { %1070 = dma.vmem_to_hbm [thread:$0]  (%p1870_p5), %s1773_s17, 256, %s1771_s13, %s1780_s22, %s1415_s29, %s1415_s29, %s1416_s20  }
 0x3de PF: > { %s1871_s21 = sld [smem:[#allocation21_spill]]  ;;  %s1872_s30 = sld [smem:[#allocation25_spill]] }
 0x3df   : > { %p1094_p12 = scmp.ge.s32.totalorder %s1404_s14, 2 }
 0x3e4   : > { %s833_s24 = sand.u32 1, %s1871_s21   ;;  %p1873_p4 = scmp.ne.s32.totalorder %s1872_s30, 0 }
 0x3e5   : > { %s834_s12 = scalar_lea.sflag [#allocation6], %s833_s24 }
 0x3e6   : > { %p1083_p1 = pnand %p1094_p12, %p1873_p4 }
 0x3e8   : > { %1379 = dma.done.wait (!%p1083_p1), %s834_s12, 256  }
 0x3e9   : > { %1381 = vsyncadd (!%p1083_p1), %s834_s12, 4294967040  ;;  %s24_s14 = sadd.s32 1, %s1404_s14   ;;  %s1874_s25 = sld [smem:[#allocation22_spill]] }
 0x3ea   : > { %p21_p13 = scmp.ge.s32.totalorder %s24_s14, 4   ;;  %s1875_s11 = sld [smem:[#allocation26_spill]] }
 0x3eb   : > { %s1876_s12 = sld [smem:[#allocation23_spill]]  ;;  %s1877_s13 = sld [smem:[#allocation24_spill]] }
 0x3ec   : > { %s1878_s30 = smov %s1388_s10  ;;  %23 = sbr.rel (!%p21_p13) target bundleno = 8 (0x8), region = 126 }
 0x3ef   : > { %s1879_s10 = smov %s1874_s25 }
 0x3f3   :  { %839 = vsyncpa [#allocation5], 1 }
 0x3f4   :  { %841 = vsyncpa [#allocation5 + $0x1], 1 }
 0x3f5   :  { %842 = vsyncpa [#allocation8], 1 }
 0x3f6   :  { %843 = vsyncpa [#allocation6], 1 }
 0x3f7   :  { %845 = vsyncpa [#allocation6 + $0x1], 1 }
 0x3f8   :  { %846 = vsyncmov [#allocation3] }
 0x3fb   :  { %s847_s19 = vpop.sfrf %846 }
 0x3fc   :  { %p987_p5 = scmp.ne.s32.totalorder %s847_s19, 0 }
 0x3fe   :  { %851 = shalt.err (%p987_p5)  }
 0x3ff   :  { %853 = vsyncmov [#allocation3 + $0x1] }
 0x402   :  { %s854_s17 = vpop.sfrf %853 }
 0x403   :  { %p988_p10 = scmp.ne.s32.totalorder %s854_s17, 0 }
 0x405   :  { %858 = shalt.err (%p988_p10)  }

</bundles_post_ra>
